<compile_context>
chip_gen: v7x
topology: tpu7x:2x2x1
jax: 0.10.0
libtpu: 0.0.40
codegen_flags: <defaults>
</compile_context>

<pallas_src>
import functools
import math

import jax
import jax.numpy as jnp
from jax.experimental import pallas as pl
from jax.experimental.pallas import tpu as pltpu


def _round_up(x, m):
    return (x + m - 1) // m * m


def _tpu_info():
    """Best-effort (num_tensorcores, vmem_capacity_bytes) with safe fallbacks."""
    cores, vmem = 1, 64 << 20                       # conservative default (v7x VMEM)
    try:
        info = pltpu.get_tpu_info()
        for attr in ("vmem_capacity_bytes", "vmem_bytes"):
            if hasattr(info, attr):
                vmem = int(getattr(info, attr))
                break
        for attr in ("num_cores", "core_count", "num_tensorcores",
                     "tensorcores_per_chip"):
            if hasattr(info, attr):
                cores = max(cores, int(getattr(info, attr)))
                break
    except Exception:
        pass
    try:
        kind = jax.devices()[0].device_kind.lower()
        if "v7" in kind:                            # 2 TensorCores per chip
            cores = max(cores, 2)
    except Exception:
        pass
    return cores, vmem


# ---------------------------------------------------------------------------
# kernels
# ---------------------------------------------------------------------------

def _attn_cross_kernel_small_h(v_ref, q_ref, wv_ref, bv_ref, wq_ref, bq_ref,
                               wl_ref, bl_ref, out_ref, *, k_actual):
    """VPU tail: final Linear(H, G) as per-glimpse multiply + lane reduce.

    Used when padded H is small (< 256); output layout (bc, G, Kp), K on lanes.
    """
    Bc, Kp, Vp = v_ref.shape
    Hp = wv_ref.shape[1]
    G = wl_ref.shape[0]

    # v projection as one tall (Bc*Kp, Vp) @ (Vp, Hp) MXU matmul; with Vp/Hp
    # lane multiples and Kp a sublane multiple the reshape is a free view.
    v2 = v_ref[...].reshape(Bc * Kp, Vp)
    vp = jnp.dot(v2, wv_ref[...], preferred_element_type=jnp.float32) + bv_ref[...]
    vp = jnp.maximum(vp, 0.0)                               # (Bc*Kp, Hp)

    qp = jnp.dot(q_ref[...], wq_ref[...], preferred_element_type=jnp.float32) + bq_ref[...]
    qp = jnp.maximum(qp, 0.0)                               # (Bc, Hp)

    # joint representation (broadcast q over the k axis); free view again
    h = vp.reshape(Bc, Kp, Hp) * qp[:, None, :]             # (Bc, Kp, Hp)

    masked = Kp != k_actual
    if masked:
        k_ids = jax.lax.broadcasted_iota(jnp.int32, (Bc, Kp), 1)

    for g in range(G):                                      # tiny static loop
        wl_g = wl_ref[g:g + 1, :]                           # (1, Hp)
        logits = jnp.sum(h * wl_g, axis=-1) + bl_ref[g]     # (Bc, Kp)
        if masked:
            logits = jnp.where(k_ids < k_actual, logits, -jnp.inf)
        m = jnp.max(logits, axis=-1, keepdims=True)
        e = jnp.exp(logits - m)
        s = jnp.sum(e, axis=-1, keepdims=True)
        # exact reciprocal: approx=True would run on the idle EUP slot but its
        # ~2^-12 relative error breaks the 1e-5 comparison tolerance.
        out_ref[:, g, :] = (e * pl.reciprocal(s, approx=False)).astype(out_ref.dtype)


def _attn_cross_kernel_large_h(v_ref, q_ref, wv_ref, bv_ref, wq_ref, bq_ref,
                               wlt_ref, bl_ref, out_ref, *, k_actual):
    """MXU tail: final Linear(H, G) on the (otherwise idle) MXU.

    Used when padded H >= 256.  Wl is passed transposed & lane-padded as
    (Hp, Gp); output is (bc, Kp, Gp) so stores are lane-dense and the softmax
    over K is a sublane reduce.
    """
    Bc, Kp, Vp = v_ref.shape
    Hp = wv_ref.shape[1]
    Gp = wlt_ref.shape[1]

    v2 = v_ref[...].reshape(Bc * Kp, Vp)
    vp = jnp.dot(v2, wv_ref[...], preferred_element_type=jnp.float32) + bv_ref[...]
    vp = jnp.maximum(vp, 0.0)                               # (Bc*Kp, Hp)

    qp = jnp.dot(q_ref[...], wq_ref[...], preferred_element_type=jnp.float32) + bq_ref[...]
    qp = jnp.maximum(qp, 0.0)                               # (Bc, Hp)

    # broadcast q over the K sublanes once, staying in the folded layout
    qp_rep = jnp.broadcast_to(qp[:, None, :], (Bc, Kp, Hp)).reshape(Bc * Kp, Hp)
    h2 = vp * qp_rep                                        # (Bc*Kp, Hp)

    logits = jnp.dot(h2, wlt_ref[...], preferred_element_type=jnp.float32) + bl_ref[...]
    logits = logits.reshape(Bc, Kp, Gp)                     # free view (Kp % 8 == 0)
    if Kp != k_actual:
        k_ids = jax.lax.broadcasted_iota(jnp.int32, (Bc, Kp, Gp), 1)
        logits = jnp.where(k_ids < k_actual, logits, -jnp.inf)
    m = jnp.max(logits, axis=1, keepdims=True)
    e = jnp.exp(logits - m)
    s = jnp.sum(e, axis=1, keepdims=True)
    out_ref[...] = (e * pl.reciprocal(s, approx=False)).astype(out_ref.dtype)


# ---------------------------------------------------------------------------
# wrapper
# ---------------------------------------------------------------------------

def attention_cross(v, q, wv, bv, wq, bq, wl, bl):
    """v: [B, K, Vd] f32; q: [B, Qd] f32.

    wv/wq: [in, out] (pre-transposed); wl: [G, H] (PyTorch layout); biases 1-D.
    Returns softmax over k, shape [B, K, G].
    """
    B, K, Vd = v.shape
    Qd = q.shape[1]
    H = wv.shape[1]
    G = wl.shape[0]

    n_cores, vmem_cap = _tpu_info()

    # ---- pad to TPU-native tiles -------------------------------------------
    # lanes (last dims) -> 128 multiples (256-multiples once H > 128, for the
    # wider v6e/v7x MXU columns); K (sublanes) -> 8 multiple.  Zero padding of
    # weights/biases keeps the maths exact; padded K rows are masked to -inf
    # inside the kernel; padded batch rows are sliced off afterwards.
    Vp = _round_up(Vd, 128)
    Qp = _round_up(Qd, 128)
    Hp = _round_up(H, 256) if H > 128 else _round_up(H, 128)
    Kp = _round_up(K, 8)

    use_mxu_tail = Hp >= 256        # final Linear on the MXU only for large H
    Gp = _round_up(G, 128) if use_mxu_tail else G
    itemsize = 4                    # f32 end-to-end (bf16 would break 1e-5 tol)

    # ---- batch tiling: VMEM-aware + generation-aware -----------------------
    def _bc_for(nb):
        if nb <= 1:
            return B
        return _round_up(-(-B // nb), 8)     # bc % 8 == 0 required when tiled

    def _vmem_need(bc):
        out_elems = bc * Kp * Gp if use_mxu_tail else bc * G * Kp
        wl_elems = Hp * Gp if use_mxu_tail else G * Hp
        blocks = (3 * bc * Kp * Vp                       # v (up to 3 buffers)
                  + 2 * (bc * Qp + out_elems)) * itemsize
        weights = 2 * (Vp * Hp + Qp * Hp + wl_elems + 2 * Hp + Gp) * itemsize
        temps = (2 * bc * Kp * Hp + bc * Hp) * itemsize  # vp, h, qp
        return blocks + weights + temps

    budget = max(int(0.4 * vmem_cap), 8 << 20)

    # a multi-core split only pays off when each core's chunk dwarfs the
    # ~0.35 us grid-step overhead
    flops_per_row = 2 * (Kp * Vp * Hp + Qp * Hp + Kp * Hp * Gp)
    worth_splitting = n_cores >= 2 and (B * flops_per_row) // n_cores > int(1e7)
    nb = min(n_cores, B) if worth_splitting else 1
    while nb < max(B, 1) and _vmem_need(_bc_for(nb)) > budget:
        nb += 1
    bc = _bc_for(nb)
    B_pad = nb * bc

    vmem_limit = int(min(max(_vmem_need(bc) + (4 << 20), 32 << 20),
                         0.9 * vmem_cap))

    # ---- zero-pad operands --------------------------------------------------
    v_p = jnp.pad(v, ((0, B_pad - B), (0, Kp - K), (0, Vp - Vd)))
    q_p = jnp.pad(q, ((0, B_pad - B), (0, Qp - Qd)))
    wv_p = jnp.pad(wv, ((0, Vp - Vd), (0, Hp - H)))
    wq_p = jnp.pad(wq, ((0, Qp - Qd), (0, Hp - H)))
    bv_p = jnp.pad(bv, (0, Hp - H)).reshape(1, Hp)
    bq_p = jnp.pad(bq, (0, Hp - H)).reshape(1, Hp)

    # weights use a constant index_map so they stay resident across grid steps
    def w_spec(shape):
        return pl.BlockSpec(shape, lambda i: (0,) * len(shape))

    if nb >= 3:
        # deeper pipelining only on the (largest, streamed) v input
        v_spec = pl.BlockSpec((bc, Kp, Vp), lambda i: (i, 0, 0),
                              pipeline_mode=pl.Buffered(3))
    else:
        v_spec = pl.BlockSpec((bc, Kp, Vp), lambda i: (i, 0, 0))

    common_in_specs = [
        v_spec,                                      # v
        pl.BlockSpec((bc, Qp), lambda i: (i, 0)),    # q
        w_spec((Vp, Hp)),                            # Wv
        w_spec((1, Hp)),                             # bv
        w_spec((Qp, Hp)),                            # Wq
        w_spec((1, Hp)),                             # bq
    ]

    if use_mxu_tail:
        wlt_p = jnp.pad(wl.T, ((0, Hp - H), (0, Gp - G)))
        bl_p = jnp.pad(bl, (0, Gp - G)).reshape(1, Gp)
        kernel = functools.partial(_attn_cross_kernel_large_h, k_actual=K)
        in_specs = common_in_specs + [w_spec((Hp, Gp)), w_spec((1, Gp))]
        out_shape = jax.ShapeDtypeStruct((B_pad, Kp, Gp), jnp.float32)
        out_specs = pl.BlockSpec((bc, Kp, Gp), lambda i: (i, 0, 0))
        args = (v_p, q_p, wv_p, bv_p, wq_p, bq_p, wlt_p, bl_p)
    else:
        wl_p = jnp.pad(wl, ((0, 0), (0, Hp - H)))
        kernel = functools.partial(_attn_cross_kernel_small_h, k_actual=K)
        in_specs = common_in_specs + [
            w_spec((G, Hp)),                                     # Wl [G, Hp]
            pl.BlockSpec(memory_space=pltpu.MemorySpace.SMEM),   # bl scalars
        ]
        out_shape = jax.ShapeDtypeStruct((B_pad, G, Kp), jnp.float32)
        out_specs = pl.BlockSpec((bc, G, Kp), lambda i: (i, 0, 0))
        args = (v_p, q_p, wv_p, bv_p, wq_p, bq_p, wl_p, bl)

    flops = B_pad * flops_per_row
    bytes_accessed = itemsize * (sum(a.size for a in args)
                                 + math.prod(out_shape.shape))

    out = pl.pallas_call(
        kernel,
        out_shape=out_shape,
        grid_spec=pltpu.PrefetchScalarGridSpec(
            num_scalar_prefetch=0,
            grid=(nb,),
            in_specs=in_specs,
            out_specs=out_specs),
        compiler_params=pltpu.CompilerParams(
            dimension_semantics=("parallel",),
            vmem_limit_bytes=vmem_limit),
        cost_estimate=pl.CostEstimate(flops=flops,
                                      transcendentals=B_pad * Kp * Gp,
                                      bytes_accessed=bytes_accessed),
    )(*args)

    if use_mxu_tail:
        return out[:B, :K, :G]
    # back to the module's [batch, k, glimpses] layout
    return jnp.transpose(out[:B, :, :K], (0, 2, 1))


# ---------------------------------------------------------------------------
# parameter construction + pure-JAX reference
# ---------------------------------------------------------------------------

def _weight_norm_effective(w, g):
    # weight_norm(..., dim=None): w_eff = g * w / ||w||_F  (g is a scalar)
    return g * w / jnp.sqrt(jnp.sum(w * w))


def _make_params(key, v_dim, q_dim, hid_dim, glimpses):
    ks = jax.random.split(key, 6)
    # nn.Linear-style init shapes: weight [out, in], bias [out]
    wv = jax.random.normal(ks[0], (hid_dim, v_dim), jnp.float32) * 0.1
    bv = jax.random.normal(ks[1], (hid_dim,), jnp.float32) * 0.1
    wq = jax.random.normal(ks[2], (hid_dim, q_dim), jnp.float32) * 0.1
    bq = jax.random.normal(ks[3], (hid_dim,), jnp.float32) * 0.1
    wl = jax.random.normal(ks[4], (glimpses, hid_dim), jnp.float32) * 0.1
    bl = jax.random.normal(ks[5], (glimpses,), jnp.float32) * 0.1
    # weight_norm g initialized to ||W||_F (PyTorch default at init)
    wv = _weight_norm_effective(wv, jnp.sqrt(jnp.sum(wv * wv)))
    wq = _weight_norm_effective(wq, jnp.sqrt(jnp.sum(wq * wq)))
    wl = _weight_norm_effective(wl, jnp.sqrt(jnp.sum(wl * wl)))
    # wv/wq transposed to [in, out] for row-major matmuls; wl stays [G, H]
    return wv.T, bv, wq.T, bq, wl, bl


def _reference(v, q, wv, bv, wq, bq, wl, bl):
    vp = jnp.maximum(jnp.einsum("bkv,vh->bkh", v, wv) + bv, 0.0)
    qp = jnp.maximum(q @ wq + bq, 0.0)[:, None, :]
    logits = jnp.einsum("bkh,gh->bkg", vp * qp, wl) + bl
    return jax.nn.softmax(logits, axis=1)


if __name__ == "__main__":
    key = jax.random.PRNGKey(0)
    k_in, k_par = jax.random.split(key)

    B, K, V_DIM, Q_DIM, HID, GLIMPSES = 2, 8, 16, 32, 32, 2

    kv, kq = jax.random.split(k_in)
    v = jax.random.normal(kv, (B, K, V_DIM), jnp.float32)
    q = jax.random.normal(kq, (B, Q_DIM), jnp.float32)

    wv, bv, wq, bq, wl, bl = _make_params(k_par, V_DIM, Q_DIM, HID, GLIMPSES)

    out = attention_cross(v, q, wv, bv, wq, bq, wl, bl)
    out = jax.block_until_ready(out)

    ref = _reference(v, q, wv, bv, wq, bq, wl, bl)
    assert out.shape == (B, K, GLIMPSES)
    assert jnp.allclose(out, ref, atol=1e-5, rtol=1e-5), "mismatch vs reference"
    # softmax over k sums to 1 per (batch, glimpse)
    assert jnp.allclose(out.sum(axis=1), jnp.ones((B, GLIMPSES)), atol=1e-5)

    print("KERNEL_OK")
</pallas_src>

<mosaic_0001>
module attributes {stable_mosaic.version = 11 : i64} {
  func.func @_attn_cross_kernel_small_h(%arg0: i32, %arg1: memref<2x8x128xf32, #tpu.memory_space<vmem>>, %arg2: memref<2x128xf32, #tpu.memory_space<vmem>>, %arg3: memref<128x128xf32, #tpu.memory_space<vmem>>, %arg4: memref<1x128xf32, #tpu.memory_space<vmem>>, %arg5: memref<128x128xf32, #tpu.memory_space<vmem>>, %arg6: memref<1x128xf32, #tpu.memory_space<vmem>>, %arg7: memref<2x128xf32, #tpu.memory_space<vmem>>, %arg8: memref<2xf32, #tpu.memory_space<smem>>, %arg9: memref<2x2x8xf32, #tpu.memory_space<vmem>>) attributes {dimension_semantics = [#tpu.dimension_semantics<parallel>], iteration_bounds = array<i64: 1>, scalar_prefetch = 0 : i64, scratch_operands = 0 : i64, tpu.core_type = #tpu.core_type<tc>, window_params = [{transform_indices = @transform_0, window_bounds = array<i64: 2, 8, 128>}, {transform_indices = @transform_1, window_bounds = array<i64: 2, 128>}, {pipeline_mode = #tpu.pipeline_mode<synchronous>, transform_indices = @transform_2, window_bounds = array<i64: 128, 128>}, {pipeline_mode = #tpu.pipeline_mode<synchronous>, transform_indices = @transform_3, window_bounds = array<i64: 1, 128>}, {pipeline_mode = #tpu.pipeline_mode<synchronous>, transform_indices = @transform_4, window_bounds = array<i64: 128, 128>}, {pipeline_mode = #tpu.pipeline_mode<synchronous>, transform_indices = @transform_5, window_bounds = array<i64: 1, 128>}, {pipeline_mode = #tpu.pipeline_mode<synchronous>, transform_indices = @transform_6, window_bounds = array<i64: 2, 128>}, {transform_indices = @transform_7, window_bounds = array<i64: 2>}, {transform_indices = @transform_8, window_bounds = array<i64: 2, 2, 8>}]} {
    %c0 = arith.constant 0 : index
    %c0_0 = arith.constant 0 : index
    %c0_1 = arith.constant 0 : index
    %0 = vector.load %arg1[%c0, %c0_0, %c0_1] : memref<2x8x128xf32, #tpu.memory_space<vmem>>, vector<2x8x128xf32>
    %1 = vector.shape_cast %0 : vector<2x8x128xf32> to vector<16x128xf32>
    %c0_2 = arith.constant 0 : index
    %c0_3 = arith.constant 0 : index
    %2 = vector.load %arg3[%c0_2, %c0_3] : memref<128x128xf32, #tpu.memory_space<vmem>>, vector<128x128xf32>
    %cst = arith.constant dense<0.000000e+00> : vector<16x128xf32>
    %3 = tpu.matmul %1, %2, %cst {dimension_numbers = #tpu.dot_dimension_numbers<[1], [0], [0], [1], [0, 0, 1, 1], [], []>} : vector<16x128xf32>, vector<128x128xf32>, vector<16x128xf32> -> vector<16x128xf32>
    %c0_4 = arith.constant 0 : index
    %c0_5 = arith.constant 0 : index
    %4 = vector.load %arg4[%c0_4, %c0_5] : memref<1x128xf32, #tpu.memory_space<vmem>>, vector<1x128xf32>
    %5 = vector.broadcast %4 : vector<1x128xf32> to vector<16x128xf32>
    %6 = arith.addf %3, %5 : vector<16x128xf32>
    %cst_6 = arith.constant 0.000000e+00 : f32
    %7 = vector.broadcast %cst_6 : f32 to vector<16x128xf32>
    %8 = arith.maximumf %6, %7 : vector<16x128xf32>
    %c0_7 = arith.constant 0 : index
    %c0_8 = arith.constant 0 : index
    %9 = vector.load %arg2[%c0_7, %c0_8] : memref<2x128xf32, #tpu.memory_space<vmem>>, vector<2x128xf32>
    %c0_9 = arith.constant 0 : index
    %c0_10 = arith.constant 0 : index
    %10 = vector.load %arg5[%c0_9, %c0_10] : memref<128x128xf32, #tpu.memory_space<vmem>>, vector<128x128xf32>
    %cst_11 = arith.constant dense<0.000000e+00> : vector<2x128xf32>
    %11 = tpu.matmul %9, %10, %cst_11 {dimension_numbers = #tpu.dot_dimension_numbers<[1], [0], [0], [1], [0, 0, 1, 1], [], []>} : vector<2x128xf32>, vector<128x128xf32>, vector<2x128xf32> -> vector<2x128xf32>
    %c0_12 = arith.constant 0 : index
    %c0_13 = arith.constant 0 : index
    %12 = vector.load %arg6[%c0_12, %c0_13] : memref<1x128xf32, #tpu.memory_space<vmem>>, vector<1x128xf32>
    %13 = vector.broadcast %12 : vector<1x128xf32> to vector<2x128xf32>
    %14 = arith.addf %11, %13 : vector<2x128xf32>
    %cst_14 = arith.constant 0.000000e+00 : f32
    %15 = vector.broadcast %cst_14 : f32 to vector<2x128xf32>
    %16 = arith.maximumf %14, %15 : vector<2x128xf32>
    %17 = vector.shape_cast %8 : vector<16x128xf32> to vector<2x8x128xf32>
    %18 = vector.shape_cast %16 : vector<2x128xf32> to vector<2x1x128xf32>
    %19 = vector.broadcast %18 : vector<2x1x128xf32> to vector<2x8x128xf32>
    %20 = arith.mulf %17, %19 : vector<2x8x128xf32>
    %c0_15 = arith.constant 0 : index
    %c0_16 = arith.constant 0 : index
    %21 = vector.load %arg7[%c0_15, %c0_16] : memref<2x128xf32, #tpu.memory_space<vmem>>, vector<1x128xf32>
    %22 = vector.shape_cast %21 : vector<1x128xf32> to vector<1x1x128xf32>
    %23 = vector.broadcast %22 : vector<1x1x128xf32> to vector<2x8x128xf32>
    %24 = arith.mulf %20, %23 : vector<2x8x128xf32>
    %cst_17 = arith.constant dense<0.000000e+00> : vector<2x8xf32>
    %25 = vector.multi_reduction <add>, %24, %cst_17 [2] : vector<2x8x128xf32> to vector<2x8xf32>
    %c0_18 = arith.constant 0 : index
    %26 = memref.load %arg8[%c0_18] : memref<2xf32, #tpu.memory_space<smem>>
    %27 = vector.broadcast %26 : f32 to vector<2x8xf32>
    %28 = arith.addf %25, %27 : vector<2x8xf32>
    %cst_19 = arith.constant dense<0xFF800000> : vector<2xf32>
    %29 = vector.multi_reduction <maximumf>, %28, %cst_19 [1] : vector<2x8xf32> to vector<2xf32>
    %30 = vector.shape_cast %29 : vector<2xf32> to vector<2x1xf32>
    %31 = vector.broadcast %30 : vector<2x1xf32> to vector<2x8xf32>
    %32 = arith.subf %28, %31 : vector<2x8xf32>
    %33 = math.exp %32 : vector<2x8xf32>
    %cst_20 = arith.constant dense<0.000000e+00> : vector<2xf32>
    %34 = vector.multi_reduction <add>, %33, %cst_20 [1] : vector<2x8xf32> to vector<2xf32>
    %35 = vector.shape_cast %34 : vector<2xf32> to vector<2x1xf32>
    %36 = tpu.reciprocal %35 : vector<2x1xf32> -> vector<2x1xf32>
    %37 = vector.broadcast %36 : vector<2x1xf32> to vector<2x8xf32>
    %38 = arith.mulf %33, %37 : vector<2x8xf32>
    %c0_21 = arith.constant 0 : index
    %c0_22 = arith.constant 0 : index
    %c0_23 = arith.constant 0 : index
    %39 = vector.load %arg9[%c0_21, %c0_22, %c0_23] : memref<2x2x8xf32, #tpu.memory_space<vmem>>, vector<2x1x8xf32>
    %40 = vector.shape_cast %39 : vector<2x1x8xf32> to vector<2x8xf32>
    %41 = vector.shape_cast %38 : vector<2x8xf32> to vector<2x1x8xf32>
    tpu.vector_store %arg9[%c0_21, %c0_22, %c0_23], %41 {strides = array<i32>} : memref<2x2x8xf32, #tpu.memory_space<vmem>>, vector<2x1x8xf32>,
    %c1 = arith.constant 1 : index
    %c0_24 = arith.constant 0 : index
    %42 = vector.load %arg7[%c1, %c0_24] : memref<2x128xf32, #tpu.memory_space<vmem>>, vector<1x128xf32>
    %43 = vector.shape_cast %42 : vector<1x128xf32> to vector<1x1x128xf32>
    %44 = vector.broadcast %43 : vector<1x1x128xf32> to vector<2x8x128xf32>
    %45 = arith.mulf %20, %44 : vector<2x8x128xf32>
    %cst_25 = arith.constant dense<0.000000e+00> : vector<2x8xf32>
    %46 = vector.multi_reduction <add>, %45, %cst_25 [2] : vector<2x8x128xf32> to vector<2x8xf32>
    %c1_26 = arith.constant 1 : index
    %47 = memref.load %arg8[%c1_26] : memref<2xf32, #tpu.memory_space<smem>>
    %48 = vector.broadcast %47 : f32 to vector<2x8xf32>
    %49 = arith.addf %46, %48 : vector<2x8xf32>
    %cst_27 = arith.constant dense<0xFF800000> : vector<2xf32>
    %50 = vector.multi_reduction <maximumf>, %49, %cst_27 [1] : vector<2x8xf32> to vector<2xf32>
    %51 = vector.shape_cast %50 : vector<2xf32> to vector<2x1xf32>
    %52 = vector.broadcast %51 : vector<2x1xf32> to vector<2x8xf32>
    %53 = arith.subf %49, %52 : vector<2x8xf32>
    %54 = math.exp %53 : vector<2x8xf32>
    %cst_28 = arith.constant dense<0.000000e+00> : vector<2xf32>
    %55 = vector.multi_reduction <add>, %54, %cst_28 [1] : vector<2x8xf32> to vector<2xf32>
    %56 = vector.shape_cast %55 : vector<2xf32> to vector<2x1xf32>
    %57 = tpu.reciprocal %56 : vector<2x1xf32> -> vector<2x1xf32>
    %58 = vector.broadcast %57 : vector<2x1xf32> to vector<2x8xf32>
    %59 = arith.mulf %54, %58 : vector<2x8xf32>
    %c0_29 = arith.constant 0 : index
    %c1_30 = arith.constant 1 : index
    %c0_31 = arith.constant 0 : index
    %60 = vector.load %arg9[%c0_29, %c1_30, %c0_31] : memref<2x2x8xf32, #tpu.memory_space<vmem>>, vector<2x1x8xf32>
    %61 = vector.shape_cast %60 : vector<2x1x8xf32> to vector<2x8xf32>
    %62 = vector.shape_cast %59 : vector<2x8xf32> to vector<2x1x8xf32>
    tpu.vector_store %arg9[%c0_29, %c1_30, %c0_31], %62 {strides = array<i32>} : memref<2x2x8xf32, #tpu.memory_space<vmem>>, vector<2x1x8xf32>,
    return
  }
  func.func @transform_0(%arg0: i32) -> (i32, i32, i32) {
    %c0_i32 = arith.constant 0 : i32
    %c0_i32_0 = arith.constant 0 : i32
    %c0_i32_1 = arith.constant 0 : i32
    return %arg0, %c0_i32, %c0_i32_0 : i32, i32, i32
  }
  func.func @transform_1(%arg0: i32) -> (i32, i32) {
    %c0_i32 = arith.constant 0 : i32
    %c0_i32_0 = arith.constant 0 : i32
    return %arg0, %c0_i32 : i32, i32
  }
  func.func @transform_2(%arg0: i32) -> (i32, i32) {
    %c0_i32 = arith.constant 0 : i32
    %c0_i32_0 = arith.constant 0 : i32
    %c0_i32_1 = arith.constant 0 : i32
    return %c0_i32, %c0_i32_0 : i32, i32
  }
  func.func @transform_3(%arg0: i32) -> (i32, i32) {
    %c0_i32 = arith.constant 0 : i32
    %c0_i32_0 = arith.constant 0 : i32
    %c0_i32_1 = arith.constant 0 : i32
    return %c0_i32, %c0_i32_0 : i32, i32
  }
  func.func @transform_4(%arg0: i32) -> (i32, i32) {
    %c0_i32 = arith.constant 0 : i32
    %c0_i32_0 = arith.constant 0 : i32
    %c0_i32_1 = arith.constant 0 : i32
    return %c0_i32, %c0_i32_0 : i32, i32
  }
  func.func @transform_5(%arg0: i32) -> (i32, i32) {
    %c0_i32 = arith.constant 0 : i32
    %c0_i32_0 = arith.constant 0 : i32
    %c0_i32_1 = arith.constant 0 : i32
    return %c0_i32, %c0_i32_0 : i32, i32
  }
  func.func @transform_6(%arg0: i32) -> (i32, i32) {
    %c0_i32 = arith.constant 0 : i32
    %c0_i32_0 = arith.constant 0 : i32
    %c0_i32_1 = arith.constant 0 : i32
    return %c0_i32, %c0_i32_0 : i32, i32
  }
  func.func @transform_7(%arg0: i32) -> i32 {
    %c0_i32 = arith.constant 0 : i32
    %c0_i32_0 = arith.constant 0 : i32
    return %c0_i32 : i32
  }
  func.func @transform_8(%arg0: i32) -> (i32, i32, i32) {
    %c0_i32 = arith.constant 0 : i32
    %c0_i32_0 = arith.constant 0 : i32
    %c0_i32_1 = arith.constant 0 : i32
    return %arg0, %c0_i32, %c0_i32_0 : i32, i32, i32
  }
}

</mosaic_0001>

<bundles_post_ra>
// kernel: tpu_custom_call.1
= control target key start
LH: loop header
LB: loop body
LE: loop exit
PB: predicated region body
PF: predicated region fallthrough
CT: control target
= control target key end

     0   :  { %13 = vsyncpa [#allocation3], 0  ;;  %s1025_s0 = inlined_call_operand.hbm [shape: f32[2,8,128], index: 0, kind: input, shape index: {}]   ;;  %s1026_s1 = inlined_call_operand.vmem [shape: f32[2,128], index: 1, kind: input, shape index: {}]   ;;  %s1027_s2 = inlined_call_operand.hbm [shape: f32[128,128], index: 2, kind: input, shape index: {}]   ;;  %s1028_s3 = inlined_call_operand.vmem [shape: f32[1,128], index: 3, kind: input, shape index: {}]   ;;  %s1029_s4 = inlined_call_operand.hbm [shape: f32[128,128], index: 4, kind: input, shape index: {}]   ;;  %s1030_s5 = inlined_call_operand.vmem [shape: f32[1,128], index: 5, kind: input, shape index: {}]   ;;  %s1031_s6 = inlined_call_operand.vmem [shape: f32[2,128], index: 6, kind: input, shape index: {}]   ;;  %s1032_s7 = inlined_call_operand.vmem [shape: f32[2], index: 7, kind: input, shape index: {}]   ;;  %s1033_s8 = inlined_call_operand.hbm [shape: f32[2,2,8], index: 8, kind: output, shape index: {}]  }
   0x1   :  { %14 = vsyncpa [#allocation7], 0 }
   0x2   :  { %15 = vsyncpa [#allocation5], 0 }
   0x3   :  { %16 = vsyncpa [#allocation4], 0  ;;  %s846_s27 = smov [#allocation6]   ;;  %s847_s29 = smov [#allocation2]  }
   0x4   :  { %s36_s28 = sshll.u32 %s846_s27, 4  ;;  %s22_s30 = sshll.u32 %s847_s29, 4  ;;  %s37_s28 = int_to_ptr.vmem [resolvable:$true] %s36_s28  ;;  %s905_s30 = int_to_ptr.vmem [resolvable:$true] %s22_s30 }
   0x5   :  { %s738_s11 = scalar_lea.hbm %s1027_s2, 2048 }
   0x6   :  { %p739_p0 = scmp.ne.s32.totalorder %s1027_s2, %s738_s11  ;;  %p742_p1 = scmp.lt.u32.totalorder %s738_s11, %s1027_s2 }
   0x8   :  { %p744_p2 = pnand %p742_p1, %p739_p0 }
   0xa   :  { %747 = shalt.err (!%p744_p2)
}
   0xb   :  { %s748_s16 = scalar_lea.vmem %s37_s28, 2048  ;;  %p753_p4 = scmp.lt.s32.totalorder %s37_s28, %s37_s28 }
   0xc   :  { %p749_p3 = scmp.ne.s32.totalorder %s37_s28, %s748_s16  ;;  %p754_p5 = scmp.lt.s32.totalorder %s748_s16, %s748_s16 }
   0xe   :  { %p755_p6 = por %p754_p5, %p753_p4 }
  0x10   :  { %p756_p7 = pnand %p755_p6, %p749_p3 }
  0x12   :  { %759 = shalt.err (!%p756_p7)
}
  0x13   :  { %s848_s17 = smov 128   ;;  %s849_s18 = smov 8  }
  0x14   :  { %42 = dma.hbm_to_vmem [thread:$0]  %s1027_s2, 2048, %s37_s28, [#allocation7], %s848_s17, %s848_s17, %s849_s18  }
  0x15   :  { %s760_s23 = scalar_lea.hbm %s1025_s0, 256 }
  0x16   :  { %p761_p8 = scmp.ne.s32.totalorder %s1025_s0, %s760_s23  ;;  %p764_p9 = scmp.lt.u32.totalorder %s760_s23, %s1025_s0 }
  0x18   :  { %p766_p10 = pnand %p764_p9, %p761_p8 }
  0x1a   :  { %769 = shalt.err (!%p766_p10)
}
  0x1b   :  { %s770_s29 = scalar_lea.vmem %s905_s30, 256  ;;  %p775_p12 = scmp.lt.s32.totalorder %s905_s30, %s905_s30 }
  0x1c   :  { %p771_p11 = scmp.ne.s32.totalorder %s905_s30, %s770_s29  ;;  %p776_p13 = scmp.lt.s32.totalorder %s770_s29, %s770_s29 }
  0x1e   :  { %p777_p0 = por %p776_p13, %p775_p12 }
  0x20   :  { %p778_p1 = pnand %p777_p0, %p771_p11 }
  0x22   :  { %781 = shalt.err (!%p778_p1)
}
  0x23   :  { %28 = dma.hbm_to_vmem [thread:$0]  %s1025_s0, 256, %s905_s30, [#allocation3], %s848_s17, %s848_s17, %s849_s18  }
  0x24   :  { %s67_s11 = sshll.u32 %s1032_s7, 4  ;;  %s850_s12 = smov [#allocation8]   ;;  %s68_s11 = int_to_ptr.vmem [resolvable:$true] %s67_s11 }
  0x25   :  { %s50_s13 = sshll.u32 %s850_s12, 4  ;;  %s782_s16 = scalar_lea.hbm %s1029_s4, 2048  ;;  %s51_s13 = int_to_ptr.vmem [resolvable:$true] %s50_s13 }
  0x26   :  { %p783_p2 = scmp.ne.s32.totalorder %s1029_s4, %s782_s16  ;;  %p786_p3 = scmp.lt.u32.totalorder %s782_s16, %s1029_s4 }
  0x28   :  { %p788_p4 = pnand %p786_p3, %p783_p2 }
  0x2a   :  { %791 = shalt.err (!%p788_p4)
}
  0x2b   :  { %s792_s0 = scalar_lea.vmem %s51_s13, 2048  ;;  %p797_p6 = scmp.lt.s32.totalorder %s51_s13, %s51_s13 }
  0x2c   :  { %p793_p5 = scmp.ne.s32.totalorder %s51_s13, %s792_s0  ;;  %p798_p7 = scmp.lt.s32.totalorder %s792_s0, %s792_s0 }
  0x2e   :  { %p799_p8 = por %p798_p7, %p797_p6 }
  0x30   :  { %p800_p9 = pnand %p799_p8, %p793_p5 }
  0x32   :  { %803 = shalt.err (!%p800_p9)
}
  0x33   :  { %56 = dma.hbm_to_vmem [thread:$0]  %s1029_s4, 2048, %s51_s13, [#allocation7], %s848_s17, %s848_s17, %s849_s18  }
  0x34   :  { %s804_s23 = scalar_lea.vmem %s68_s11, 16  ;;  %p809_p11 = scmp.lt.s32.totalorder %s68_s11, %s68_s11 }
  0x35   :  { %p805_p10 = scmp.ne.s32.totalorder %s68_s11, %s804_s23  ;;  %p810_p12 = scmp.lt.s32.totalorder %s804_s23, %s804_s23 }
  0x37   :  { %p811_p13 = por %p810_p12, %p809_p11 }
  0x39   :  { %p812_p0 = pnand %p811_p13, %p805_p10 }
  0x3b   :  { %815 = shalt.err (!%p812_p0)
}
  0x3c   :  { %s851_s24 = smov [#allocation9]  }
  0x3d   :  { %70 = dma.vmem_to_smem %s68_s11, 16, %s851_s24, [#allocation5]  }
  0x3e   :  { %838 = dma.done.wait [#allocation3], 256  }
  0x3f   :  { %839 = vsyncadd [#allocation3], 4294967040 }
  0x40   :  { %840 = dma.done.wait [#allocation7], 4096  }
  0x41   :  { %841 = vsyncadd [#allocation7], 4294963200 }
  0x42   :  { %842 = dma.done.wait [#allocation5], 16  }
  0x43   :  { %843 = vsyncadd [#allocation5], 4294967280 }
  0x44   :  { %83 = sfence }
  0x45   :  { %v187_v0 = vld [vmem:[#allocation8] sm:$0xff]  ;;  %v188_v1 = vld [vmem:[#allocation8 + $0x8] sm:$0xff]  ;;  %v852_v3 = vmov 0.0|0.0   ;;  %v189_v6 = vld [vmem:[#allocation8 + $0x10] sm:$0xff]  ;;  %vm853_vm0 = vmmov 0   ;;  %v854_v8 = vmov 0.0   ;;  %v285_v55 = vlaneseq }
  0x46   :  { %v86_v2 = vld [vmem:[#allocation6] sm:$0xff]  ;;  %686 = vmatprep.subr.bf16.mxu1 %v852_v3  ;;  %v687_v4 = vpack.c.bf16 %v188_v1, %v187_v0  ;;  %v87_v5 = vld [vmem:[#allocation6 + $0x8] sm:$0xff]  ;;  %v190_v7 = vld [vmem:[#allocation8 + $0x18] sm:$0xff]  ;;  %651 = vmatprep.mubr.msk.f32.mxu1 %vm853_vm0, %v854_v8  ;;  %v855_v53 = vmov 1966171168   ;;  %s548_s2 = sld [smem:[#allocation9 + $0x1]] }
  0x47   :  { %v654_v9 = vpack.c.bf16 %v87_v5, %v86_v2  ;;  %v88_v10 = vld [vmem:[#allocation6 + $0x10] sm:$0xff]  ;;  %v89_v11 = vld [vmem:[#allocation6 + $0x18] sm:$0xff]  ;;  %v690_v12 = vpack.c.bf16 %v190_v7, %v189_v6  ;;  %v90_v14 = vld [vmem:[#allocation6 + $0x20] sm:$0xff]  ;;  %v283_v54 = vunpack.c.l.s4 %v855_v53  ;;  %v286_v57 = vshrl.u32 %v285_v55, 7  ;;  %s327_s28 = sld [smem:[#allocation9]] }
  0x48   :  { %688 = vmatpush3.bf16.msra.mxu1 %v687_v4  ;;  %v658_v13 = vpack.c.bf16 %v89_v11, %v88_v10  ;;  %v91_v15 = vld [vmem:[#allocation6 + $0x28] sm:$0xff]  ;;  %v191_v16 = vld [vmem:[#allocation8 + $0x20] sm:$0xff]  ;;  %v92_v20 = vld [vmem:[#allocation6 + $0x30] sm:$0xff]  ;;  %vm343_vm1 = vcmask 1041409   ;;  %vm346_vm2 = vcmask 58368   ;;  %vm420_vm3 = vcmask 57344  }
  0x49   :  { %655 = vmatprep.subr.bf16.mxu0 %v654_v9  ;;  %689 = vmatprep.subr.bf16.mxu1 %v852_v3  ;;  %v192_v17 = vld [vmem:[#allocation8 + $0x28] sm:$0xff]  ;;  %v662_v18 = vpack.c.bf16 %v91_v15, %v90_v14  ;;  %v93_v21 = vld [vmem:[#allocation6 + $0x38] sm:$0xff]  ;;  %v193_v22 = vld [vmem:[#allocation8 + $0x30] sm:$0xff]  ;;  %v284_v56 = vunpack.c.0.s8 %v283_v54  ;;  %v977_v5 = vsub.s32 0, %v286_v57 }
  0x4a   :  { %657 = vmatpush3.bf16.msra.mxu0 %v654_v9  ;;  %v693_v19 = vpack.c.bf16 %v192_v17, %v191_v16  ;;  %v194_v23 = vld [vmem:[#allocation8 + $0x38] sm:$0xff]  ;;  %v666_v24 = vpack.c.bf16 %v93_v21, %v92_v20  ;;  %v94_v26 = vld [vmem:[#allocation6 + $0x40] sm:$0xff]  ;;  %v95_v27 = vld [vmem:[#allocation6 + $0x48] sm:$0xff] }
  0x4b   :  { %659 = vmatprep.subr.bf16.mxu0 %v658_v13  ;;  %v696_v25 = vpack.c.bf16 %v194_v23, %v193_v22  ;;  %v84_v28 = vld [vmem:[#allocation2] sm:$0xff]  ;;  %v195_v29 = vld [vmem:[#allocation8 + $0x40] sm:$0xff]  ;;  %v196_v30 = vld [vmem:[#allocation8 + $0x48] sm:$0xff]  ;;  %v670_v31 = vpack.c.bf16 %v95_v27, %v94_v26  ;;  %v287_v61 = vsub.s32 %v284_v56, %v286_v57  ;;  %v334_v22 = vand.u32 127, %v285_v55 }
  0x4c   :  { %691 = vmatpush3.bf16.msra.mxu1 %v690_v12  ;;  %616 = vmatprep.mubr.f32.mxu0 %v84_v28  ;;  %v699_v32 = vpack.c.bf16 %v196_v30, %v195_v29  ;;  %v96_v33 = vld [vmem:[#allocation6 + $0x50] sm:$0xff]  ;;  %v97_v34 = vld [vmem:[#allocation6 + $0x58] sm:$0xff]  ;;  %v98_v39 = vld [vmem:[#allocation6 + $0x60] sm:$0xff]  ;;  %v435_v23 = vstv %s548_s2 }
  0x4d   :  { %692 = vmatprep.subr.bf16.mxu1 %v852_v3  ;;  %v197_v35 = vld [vmem:[#allocation8 + $0x50] sm:$0xff]  ;;  %v198_v36 = vld [vmem:[#allocation8 + $0x58] sm:$0xff]  ;;  %v674_v37 = vpack.c.bf16 %v97_v34, %v96_v33  ;;  %v99_v40 = vld [vmem:[#allocation6 + $0x68] sm:$0xff]  ;;  %v987_v27 = vsub.s32 %v334_v22, %v286_v57 }
  0x4e   :  { %661 = vmatpush3.bf16.msra.mxu0 %v658_v13  ;;  %v702_v38 = vpack.c.bf16 %v198_v36, %v197_v35  ;;  %v199_v41 = vld [vmem:[#allocation8 + $0x60] sm:$0xff]  ;;  %v200_v42 = vld [vmem:[#allocation8 + $0x68] sm:$0xff]  ;;  %v678_v43 = vpack.c.bf16 %v99_v40, %v98_v39  ;;  %v100_v45 = vld [vmem:[#allocation6 + $0x70] sm:$0xff] }
  0x4f   :  { %663 = vmatprep.subr.bf16.mxu0 %v662_v18  ;;  %v705_v44 = vpack.c.bf16 %v200_v42, %v199_v41  ;;  %v101_v46 = vld [vmem:[#allocation6 + $0x78] sm:$0xff]  ;;  %v201_v47 = vld [vmem:[#allocation8 + $0x70] sm:$0xff]  ;;  %v856_v42 = vmov 0  }
  0x50   :  { %694 = vmatpush3.bf16.msra.mxu1 %v693_v19  ;;  %v202_v48 = vld [vmem:[#allocation8 + $0x78] sm:$0xff]  ;;  %v682_v49 = vpack.c.bf16 %v101_v46, %v100_v45  ;;  %v186_v51 = vld [vmem:[%s1026_s1] sm:$0x3]  ;;  %725 = vset.pattern.permute.xlu1 %v856_v42 }
  0x51   :  { %695 = vmatprep.subr.bf16.mxu1 %v852_v3  ;;  %v708_v50 = vpack.c.bf16 %v202_v48, %v201_v47  ;;  %v85_v52 = vld [vmem:[#allocation2 + $0x8] sm:$0xff]  ;;  %v545_v58 = vld [vmem:[%s1030_s5] ss:$0 sm:$0xff]  ;;  %v547_v12 = vld [vmem:[%s1031_s6 + $0x1] ss:$0 sm:$0xff]  ;;  %724 = vset.pattern.permute.xlu0 %v856_v42 }
  0x52   :  { %665 = vmatpush3.bf16.msra.mxu0 %v662_v18  ;;  %v544_v63 = vld [vmem:[%s1028_s3] ss:$0 sm:$0xff] }
  0x53   :  { %667 = vmatprep.subr.bf16.mxu0 %v666_v24  ;;  %v546_v13 = vld [vmem:[%s1031_s6] ss:$0 sm:$0xff]  ;;  %s857_s6 = smov [#allocation10]  }
  0x54   :  { %697 = vmatpush3.bf16.msra.mxu1 %v696_v25  ;;  %v328_v25 = vstv %s327_s28  ;;  %s530_s9 = sshll.u32 %s857_s6, 4  ;;  %s531_s9 = int_to_ptr.vmem [resolvable:$true] %s530_s9 }
  0x55   :  { %698 = vmatprep.subr.bf16.mxu1 %v852_v3  ;;  %s816_s10 = scalar_lea.vmem %s531_s9, 64  ;;  %p821_p2 = scmp.lt.s32.totalorder %s531_s9, %s531_s9 }
  0x56   :  { %669 = vmatpush3.bf16.msra.mxu0 %v666_v24  ;;  %p817_p1 = scmp.ne.s32.totalorder %s531_s9, %s816_s10  ;;  %p822_p3 = scmp.lt.s32.totalorder %s816_s10, %s816_s10 }
  0x57   :  { %671 = vmatprep.subr.bf16.mxu0 %v670_v31 }
  0x58   :  { %700 = vmatpush3.bf16.msra.mxu1 %v699_v32  ;;  %p823_p4 = por %p822_p3, %p821_p2 }
  0x59   :  { %701 = vmatprep.subr.bf16.mxu1 %v852_v3 }
  0x5a   :  { %673 = vmatpush3.bf16.msra.mxu0 %v670_v31  ;;  %p824_p5 = pnand %p823_p4, %p817_p1 }
  0x5b   :  { %675 = vmatprep.subr.bf16.mxu0 %v674_v37 }
  0x5c   :  { %703 = vmatpush3.bf16.msra.mxu1 %v702_v38 }
  0x5d   :  { %704 = vmatprep.subr.bf16.mxu1 %v852_v3 }
  0x5e   :  { %677 = vmatpush3.bf16.msra.mxu0 %v674_v37 }
  0x5f   :  { %679 = vmatprep.subr.bf16.mxu0 %v678_v43 }
  0x60   :  { %706 = vmatpush3.bf16.msra.mxu1 %v705_v44 }
  0x61   :  { %707 = vmatprep.subr.bf16.mxu1 %v852_v3 }
  0x62   :  { %681 = vmatpush3.bf16.msra.mxu0 %v678_v43  ;;  %v357_v43 = vsub.s32 1, %v286_v57 }
  0x63   :  { %683 = vmatprep.subr.bf16.mxu0 %v682_v49 }
  0x64   :  { %709 = vmatpush3.bf16.msra.mxu1 %v708_v50 }
  0x66   :  { %685 = vmatpush3.bf16.msra.mxu0 %v682_v49 }
  0x67   :  { %652 = vmatmul.mubr.f32.vlgmr.msra.gmra.mrb[0].mxu1 %v186_v51 }
  0x69   :  { %617 = vmatmul.mubr.f32.vlgmr.msra.gmra.mrb[0].mxu0 %v85_v52 }
 0x13a   :  { %v276_v59 = vpop.f32.mrb[0].mxu1 }
 0x13b   :  { %v277_v60 = vadd.f32 %v545_v58, %v276_v59  ;;  %v653_v62 = vpop.f32.mrb[1].mxu1 }
 0x13c   :  { %v618_v0 = vpop.f32.mrb[0].mxu0 }
 0x13d   :  { %v280_v1 = vmax.f32 %v277_v60, 0.0  ;;  %v175_v2 = vpop.f32.mrb[1].mxu0  ;;  %v181_v8 = vadd.f32 %v618_v0, %v544_v63 }
 0x13e   :  { %v176_v3 = vadd.f32 %v544_v63, %v175_v2 }
 0x13f   :  { %v288_v4 = vrot.slane %v280_v1, %v287_v61  ;;  %v185_v14 = vmax.f32 %v181_v8, 0.0 }
 0x140   :  { %v184_v9 = vmax.f32 %v176_v3, 0.0 }
 0x141   :  { %v289_v6 = vcombine.high %v288_v4, %v288_v4  ;;  %v296_v7 = vrot.slane %v288_v4, %v287_v61 }
 0x143   :  { %v303_v10 = vrot.slane %v289_v6, %v287_v61  ;;  %v307_v11 = vrot.slane %v296_v7, %v977_v5 }
 0x145   :  { %v311_v15 = vrot.slane %v303_v10, %v977_v5  ;;  %v314_v16 = vmul.f32 %v307_v11, %v184_v9 }
 0x147   :  { %v315_v17 = vmul.f32 %v311_v15, %v185_v14  ;;  %v428_v18 = vmul.f32 %v547_v12, %v314_v16  ;;  %v321_v19 = vmul.f32 %v546_v13, %v314_v16 }
 0x149   :  { %430 = vadd.xlane.f32.xlu1 %v428_v18  ;;  %323 = vadd.xlane.f32.xlu0 %v321_v19  ;;  %v429_v20 = vmul.f32 %v547_v12, %v315_v17  ;;  %v322_v21 = vmul.f32 %v546_v13, %v315_v17 }
 0x14d   :  { %432 = vadd.xlane.f32.xlu1 %v429_v20  ;;  %325 = vadd.xlane.f32.xlu0 %v322_v21 }
 0x1d6   :  { %v431_v24 = vpop.xlane.xlu1 %430  ;;  %v324_v26 = vpop.xlane.xlu0 %323 }
 0x1d7   :  { %v436_v28 = vadd.f32 %v435_v23, %v431_v24  ;;  %v329_v29 = vadd.f32 %v328_v25, %v324_v26 }
 0x1d9   :  { %v443_v34 = vrot.slane %v436_v28, %v987_v27  ;;  %v338_v35 = vrot.slane %v329_v29, %v987_v27 }
 0x1da   :  { %v433_v30 = vpop.xlane.xlu1 %432  ;;  %v326_v31 = vpop.xlane.xlu0 %325 }
 0x1db   :  { %v437_v32 = vadd.f32 %v435_v23, %v433_v30  ;;  %v330_v33 = vadd.f32 %v328_v25, %v326_v31 }
 0x1dd   :  { %v447_v36 = vrot.slane %v437_v32, %v987_v27  ;;  %v342_v37 = vrot.slane %v330_v33, %v987_v27 }
 0x1df   :  { %v448_v38 = vsel %vm343_vm1, %v447_v36, %v443_v34  ;;  %v344_v39 = vsel %vm343_vm1, %v342_v37, %v338_v35 }
 0x1e0   :  { %v450_v40 = vsel %vm346_vm2, %v448_v38, -inf  ;;  %v347_v41 = vsel %vm346_vm2, %v344_v39, -inf }
 0x1e1   :  { %451 = vmax.xlane.f32.xlu1 %v450_v40  ;;  %348 = vmax.xlane.f32.xlu0 %v347_v41 }
 0x26e   :  { %v452_v44 = vpop.xlane.xlu1 %451  ;;  %v349_v45 = vpop.xlane.xlu0 %348 }
 0x26f   :  { %v354_v46 = vrot.slane %v349_v45, %v977_v5  ;;  %v358_v47 = vrot.slane %v349_v45, %v357_v43  ;;  %v457_v48 = vrot.slane %v452_v44, %v977_v5  ;;  %v461_v52 = vrot.slane %v452_v44, %v357_v43 }
 0x271   :  { %v361_v49 = vsub.f32 %v329_v29, %v354_v46  ;;  %v362_v50 = vsub.f32 %v330_v33, %v358_v47  ;;  %v464_v53 = vsub.f32 %v436_v28, %v457_v48  ;;  %v465_v55 = vsub.f32 %v437_v32, %v461_v52 }
 0x273   :  { %v363_v51 = vmul.f32 1.442695, %v361_v49  ;;  %v365_v54 = vmul.f32 1.442695, %v362_v50  ;;  %v466_v56 = vmul.f32 1.442695, %v464_v53 }
 0x274   :  { %v468_v58 = vmul.f32 1.442695, %v465_v55 }
 0x275   :  { %726 = vpow2.f32 %v363_v51 }
 0x276   :  { %728 = vpow2.f32 %v365_v54 }
 0x277   :  { %730 = vpow2.f32 %v466_v56 }
 0x278   :  { %732 = vpow2.f32 %v468_v58 }
 0x27f   :  { %v727_v57 = vpop.eup %726 }
 0x280   :  { %v729_v59 = vpop.eup %728  ;;  %370 = vperm.xlu0 %724, %v727_v57  }
 0x281   :  { %373 = vperm.xlu1 %725, %v729_v59   ;;  %v731_v60 = vpop.eup %730 }
 0x282   :  { %v733_v61 = vpop.eup %732 }
 0x285   :  { %473 = vperm.xlu1 %725, %v731_v60  }
 0x289   :  { %476 = vperm.xlu1 %725, %v733_v61  }
 0x2ff   :  { %v371_v62 = vpop.permute.xlu0 %370 }
 0x300   :  { %v374_v63 = vpop.permute.xlu1 %373  ;;  %v378_v0 = vrot.slane %v371_v62, %v987_v27 }
 0x301   :  { %v382_v1 = vrot.slane %v374_v63, %v987_v27 }
 0x303   :  { %v383_v2 = vsel %vm343_vm1, %v382_v1, %v378_v0 }
 0x304   :  { %v474_v3 = vpop.permute.xlu1 %473  ;;  %v385_v4 = vsel %vm346_vm2, %v383_v2, 0.0 }
 0x305   :  { %386 = vadd.xlane.f32.xlu1 %v385_v4  ;;  %v481_v7 = vrot.slane %v474_v3, %v987_v27 }
 0x308   :  { %v477_v6 = vpop.permute.xlu1 %476 }
 0x309   :  { %v485_v8 = vrot.slane %v477_v6, %v987_v27 }
 0x30b   :  { %v486_v9 = vsel %vm343_vm1, %v485_v8, %v481_v7 }
 0x30c   :  { %v488_v10 = vsel %vm346_vm2, %v486_v9, 0.0 }
 0x30d   :  { %489 = vadd.xlane.f32.xlu0 %v488_v10 }
 0x392   :  { %v387_v11 = vpop.xlane.xlu1 %386 }
 0x393   :  { %734 = vrcp.f32 %v387_v11 }
 0x39a   :  { %v490_v12 = vpop.xlane.xlu0 %489 }
 0x39b   :  { %736 = vrcp.f32 %v490_v12 }
 0x39d   :  { %v735_v13 = vpop.eup %734 }
 0x39e   :  { %v397_v14 = vrot.slane %v735_v13, %v357_v43  ;;  %v393_v15 = vrot.slane %v735_v13, %v977_v5 }
 0x3a0   :  { %v401_v16 = vmul.f32 %v729_v59, %v397_v14  ;;  %v400_v17 = vmul.f32 %v727_v57, %v393_v15 }
 0x3a2   :  { %408 = vperm.xlu0 %724, %v401_v16   ;;  %405 = vperm.xlu1 %725, %v400_v17  }
 0x3a5   :  { %v737_v18 = vpop.eup %736 }
 0x3a6   :  { %v496_v19 = vrot.slane %v737_v18, %v977_v5  ;;  %v500_v21 = vrot.slane %v737_v18, %v357_v43 }
 0x3a8   :  { %v503_v20 = vmul.f32 %v731_v60, %v496_v19  ;;  %v504_v22 = vmul.f32 %v733_v61, %v500_v21 }
 0x3aa   :  { %508 = vperm.xlu1 %725, %v503_v20  }
 0x3ae   :  { %511 = vperm.xlu1 %725, %v504_v22  }
 0x421   :  { %v406_v23 = vpop.permute.xlu1 %405  ;;  %v409_v24 = vpop.permute.xlu0 %408 }
 0x422   :  { %v413_v25 = vrot.slane %v406_v23, %v987_v27  ;;  %v417_v26 = vrot.slane %v409_v24, %v987_v27 }
 0x424   :  { %421 = vst.msk [vmem:[#allocation10] sm:$0x1] %vm420_vm3, %v413_v25  ;;  %422 = vst.msk [vmem:[#allocation10 + $0x2] sm:$0x1] %vm420_vm3, %v417_v26 }
 0x429   :  { %v509_v28 = vpop.permute.xlu1 %508 }
 0x42a   :  { %v516_v29 = vrot.slane %v509_v28, %v987_v27 }
 0x42c   :  { %523 = vst.msk [vmem:[#allocation10 + $0x1] sm:$0x1] %vm420_vm3, %v516_v29 }
 0x42d   :  { %v512_v5 = vpop.permute.xlu1 %511 }
 0x42e   :  { %v520_v30 = vrot.slane %v512_v5, %v987_v27 }
 0x430   :  { %524 = vst.msk [vmem:[#allocation10 + $0x3] sm:$0x1] %vm420_vm3, %v520_v30 }
 0x431   :  { %827 = shalt.err (!%p824_p5)
}
 0x432   :  { %s828_s13 = scalar_lea.hbm %s1033_s8, 64 }
 0x433   :  { %p829_p6 = scmp.ne.s32.totalorder %s1033_s8, %s828_s13  ;;  %p832_p7 = scmp.lt.u32.totalorder %s828_s13, %s1033_s8 }
 0x435   :  { %p834_p8 = pnand %p832_p7, %p829_p6 }
 0x437   :  { %837 = shalt.err (!%p834_p8)
}
 0x438   :  { %s858_s20 = smov 32   ;;  %s859_s21 = smov 2  }
 0x439   :  { %536 = dma.vmem_to_hbm [thread:$0]  %s531_s9, 64, %s1033_s8, [#allocation4], %s858_s20, %s858_s20, %s859_s21  }
 0x43a   :  { %844 = dma.done.wait [#allocation4], 64  }
 0x43b   :  { %845 = vsyncadd [#allocation4], 4294967232 }
 0x43c   :  { %540 = vsyncpa [#allocation3], 1 }
 0x43d   :  { %541 = vsyncpa [#allocation7], 1 }
 0x43e   :  { %542 = vsyncpa [#allocation4], 1 }
 0x43f   :  { %543 = vsyncpa [#allocation5], 1 }

</bundles_post_ra>
